<compile_context>
chip_gen: v5e
topology: v5e:2x2
jax: 0.10.0
libtpu: 0.0.40
codegen_flags: <defaults>
</compile_context>

<pallas_src>
import math

import jax
import jax.numpy as jnp
from jax.experimental import pallas as pl
from jax.experimental.pallas import tpu as pltpu


# -----------------------------------------------------------------------------
# Hardware / spec helpers.
# -----------------------------------------------------------------------------
def _vmem_capacity_bytes():
    """Physical VMEM per TensorCore (128 MiB v5e/v6e, 64 MiB v7x)."""
    try:
        return int(pltpu.get_tpu_info().vmem_capacity_bytes)
    except Exception:
        # Conservative fallback (assume the small v7x size) if the query is
        # unavailable (e.g. interpret mode / older jax).
        return 64 << 20


def _maybe_single_buffered(block_shape, index_map):
    """BlockSpec with single buffering (pl.Buffered(1)) for blocks whose index
    only changes on the slow (batch) axis; falls back gracefully if this jax
    version does not accept the pipeline_mode hint."""
    try:
        return pl.BlockSpec(block_shape, index_map,
                            pipeline_mode=pl.Buffered(1))
    except (TypeError, AttributeError, ValueError):
        return pl.BlockSpec(block_shape, index_map)


# -----------------------------------------------------------------------------
# Kernel bodies.
# -----------------------------------------------------------------------------
def _make_resident_kernel(inv_scale, emit_attn):
    """Resident-KV variant: full K/V/k_pe per batch, softmax over all keys."""

    def kernel(q_ref, k_ref, vt_ref, qpe_ref, kpe_ref, ctx_ref, *rest):
        q = q_ref[0]
        q = q * jnp.asarray(inv_scale, dtype=q.dtype)     # fold 1/scale into q
        k = k_ref[0]                                      # (Lk, D)  resident
        vt = vt_ref[0]                                    # (D, Lk)  resident

        # scores = (q/scale) @ k^T : both contract on lane dims (no transpose).
        scores = jax.lax.dot_general(q, k, (((1,), (1,)), ((), ())),
                                     preferred_element_type=jnp.float32)
        # TUPE bias recomputed in-kernel (tiny extra MXU matmul) instead of
        # streaming an O(Lq*Lk) f32 bias from HBM every step.
        qpe = qpe_ref[...] * inv_scale                    # f32 bias path
        scores = scores + jax.lax.dot_general(
            qpe, kpe_ref[...], (((1,), (1,)), ((), ())),
            preferred_element_type=jnp.float32)

        # Numerically-stable softmax over the key dimension.
        m = jnp.max(scores, axis=-1, keepdims=True)
        e = jnp.exp(scores - m)
        s = jnp.sum(e, axis=-1, keepdims=True)
        r = pl.reciprocal(s, approx=True)                 # EUP slot
        r = r * (2.0 - s * r)                             # Newton refine on a
        r = r * (2.0 - s * r)                             # (tq,1) vector: ~free
        attn = e * r                                      # (tq, Lk)

        # TODO(synk): nn.Dropout is identity in eval / p=0; training-time RNG
        # dropout is not reproduced here.

        # ctx^T[d, q] = sum_k vt[d, k] * attn[q, k]; both operands contract on
        # their lane dim -> MXU-native, no per-step vxpose of V or attn.
        ctx_t = jax.lax.dot_general(vt, attn.astype(vt.dtype),
                                    (((1,), (1,)), ((), ())),
                                    preferred_element_type=jnp.float32)
        ctx_ref[0] = ctx_t.astype(ctx_ref.dtype)
        if emit_attn:
            rest[0][0] = attn.astype(rest[0].dtype)

    return kernel


def _make_kv_tiled_kernel(inv_scale):
    """KV-tiled online-softmax variant (return_attn=False only)."""

    def kernel(q_ref, k_ref, v_ref, qpe_ref, kpe_ref, ctx_ref,
               m_ref, l_ref, acc_ref):
        j = pl.program_id(2)

        @pl.when(j == 0)
        def _():
            m_ref[...] = jnp.full_like(m_ref, -jnp.inf)
            l_ref[...] = jnp.zeros_like(l_ref)
            acc_ref[...] = jnp.zeros_like(acc_ref)

        q = q_ref[0]
        q = q * jnp.asarray(inv_scale, dtype=q.dtype)     # fold 1/scale into q
        s = jax.lax.dot_general(q, k_ref[0], (((1,), (1,)), ((), ())),
                                preferred_element_type=jnp.float32)
        qpe = qpe_ref[...] * inv_scale                    # f32 bias path
        s = s + jax.lax.dot_general(qpe, kpe_ref[...], (((1,), (1,)), ((), ())),
                                    preferred_element_type=jnp.float32)

        m_prev = m_ref[...]
        m_new = jnp.maximum(m_prev, jnp.max(s, axis=-1, keepdims=True))
        alpha = jnp.exp(m_prev - m_new)
        p = jnp.exp(s - m_new)
        l_ref[...] = alpha * l_ref[...] + jnp.sum(p, axis=-1, keepdims=True)
        acc_ref[...] = alpha * acc_ref[...] + jax.lax.dot_general(
            p.astype(v_ref.dtype), v_ref[0], (((1,), (0,)), ((), ())),
            preferred_element_type=jnp.float32)
        m_ref[...] = m_new

        @pl.when(j == pl.num_programs(2) - 1)
        def _():
            l = l_ref[...]
            r = pl.reciprocal(l, approx=True)
            r = r * (2.0 - l * r)
            r = r * (2.0 - l * r)
            # Probabilities never normalized over (tq, tk): only the (tq, D)
            # accumulator is scaled (r broadcasts along lanes -> no relayout).
            ctx_ref[0] = (acc_ref[...] * r).astype(ctx_ref.dtype)

    return kernel


# -----------------------------------------------------------------------------
# Tiling / VMEM budgeting.
# -----------------------------------------------------------------------------
def _resident_tq_cands(Lq):
    # ctx output tile puts tq in the lane dim -> tq % 128 == 0, or tq == Lq.
    return [Lq] + [t for t in (1024, 512, 384, 256, 128)
                   if t < Lq and Lq % t == 0]


def _resident_block_bytes(tq, Lk, D, itemsize, attn_itemsize, emit_attn):
    db = 2                                   # double-buffered operands
    b = db * tq * D * itemsize               # q tile
    b += db * tq * D * 4                     # q_pe tile (f32)
    b += Lk * D * itemsize                   # K    (single-buffered, resident)
    b += D * Lk * itemsize                   # V^T  (single-buffered, resident)
    b += Lk * D * 4                          # k_pe (single-buffered, resident)
    b += db * D * tq * itemsize              # ctx^T tile
    if emit_attn:
        b += db * tq * Lk * attn_itemsize    # attn tile
    b += 3 * tq * Lk * 4                     # live f32 score/exp intermediates
    return b


def _pick_resident_tq(Lq, Lk, D, itemsize, attn_itemsize, emit_attn, budget):
    cands = _resident_tq_cands(Lq)
    for tq in cands:
        if _resident_block_bytes(tq, Lk, D, itemsize, attn_itemsize,
                                 emit_attn) <= budget:
            return tq
    # May still exceed the budget; callers switch to the KV-tiled variant when
    # possible (return_attn=False).  Returning attn at such sizes is inherently
    # O(Lq*Lk) per tile.
    return cands[-1]


def _pick_kv_tiles(Lq, Lk, D, itemsize, budget, q_block=None, kv_block=None):
    tqs = [t for t in (512, 256, 128, 64, 32, 16, 8) if Lq % t == 0] or [Lq]
    tks = [t for t in (512, 256, 128, 64, 32, 16, 8) if Lk % t == 0] or [Lk]
    if q_block is not None and (q_block == Lq or
                                (Lq % q_block == 0 and q_block % 8 == 0)):
        tqs = [q_block]
    if kv_block is not None and (kv_block == Lk or
                                 (Lk % kv_block == 0 and kv_block % 8 == 0)):
        tks = [kv_block]

    def block_bytes(tq, tk):
        b = 2 * tq * D * (itemsize + 4)          # q + q_pe (double-buffered)
        b += 2 * tk * D * (2 * itemsize + 4)     # k, v, k_pe (double-buffered)
        b += 2 * tq * D * itemsize               # ctx tile
        b += 8 * tq + tq * D * 4                 # m, l, acc scratch
        b += 3 * tq * tk * 4                     # f32 intermediates
        return b

    for tq in tqs:
        for tk in tks:
            if block_bytes(tq, tk) <= budget:
                return tq, tk, block_bytes(tq, tk)
    tq, tk = tqs[-1], tks[-1]
    return tq, tk, block_bytes(tq, tk)


# -----------------------------------------------------------------------------
# pallas_call wrappers.
# -----------------------------------------------------------------------------
def _resident_call(q, k, v, q_pe, k_pe, inv_scale, attn_dtype, return_attn,
                   tile_budget, limit_cap):
    B, Lq, D = q.shape
    Lk = k.shape[1]
    in_dtype = q.dtype
    itemsize = jnp.dtype(in_dtype).itemsize
    attn_itemsize = jnp.dtype(attn_dtype).itemsize

    tq = _pick_resident_tq(Lq, Lk, D, itemsize, attn_itemsize, return_attn,
                           tile_budget)
    # Batch leads so (with megacore sharding on v7x) each TensorCore keeps its
    # own K/V resident; both axes are marked parallel so the compiler may shard
    # either when B is small/odd.
    grid = (B, Lq // tq)

    # Pre-transpose V once in XLA -> both kernel matmuls contract on lane dims.
    v_t = jnp.transpose(v, (0, 2, 1))                      # (B, D, Lk)
    kernel = _make_resident_kernel(inv_scale, return_attn)

    in_specs = [
        pl.BlockSpec((1, tq, D), lambda b, i: (b, i, 0)),            # q
        _maybe_single_buffered((1, Lk, D), lambda b, i: (b, 0, 0)),  # K
        _maybe_single_buffered((1, D, Lk), lambda b, i: (b, 0, 0)),  # V^T
        pl.BlockSpec((tq, D), lambda b, i: (i, 0)),                  # q_pe
        _maybe_single_buffered((Lk, D), lambda b, i: (0, 0)),        # k_pe
    ]
    ctx_shape = jax.ShapeDtypeStruct((B, D, Lq), in_dtype)
    ctx_spec = pl.BlockSpec((1, D, tq), lambda b, i: (b, 0, i))
    if return_attn:
        out_shape = (ctx_shape, jax.ShapeDtypeStruct((B, Lq, Lk), attn_dtype))
        out_specs = (ctx_spec, pl.BlockSpec((1, tq, Lk), lambda b, i: (b, i, 0)))
    else:
        out_shape = ctx_shape
        out_specs = ctx_spec

    block_bytes = _resident_block_bytes(tq, Lk, D, itemsize, attn_itemsize,
                                        return_attn)
    vmem_limit = int(min(limit_cap, max(32 << 20, block_bytes * 3 // 2)))

    flops = 6 * B * Lq * Lk * D              # q@k^T, bias, attn@v (2 flop/MAC)
    transcendentals = B * Lq * Lk            # exp
    bytes_accessed = ((q.size + k.size + v.size) * itemsize
                      + B * (Lq + Lk) * D * 4                 # pe projections
                      + B * D * Lq * itemsize                 # context
                      + (B * Lq * Lk * attn_itemsize if return_attn else 0))

    outs = pl.pallas_call(
        kernel,
        out_shape=out_shape,
        grid_spec=pltpu.PrefetchScalarGridSpec(
            num_scalar_prefetch=0,
            grid=grid,
            in_specs=in_specs,
            out_specs=out_specs),
        compiler_params=pltpu.CompilerParams(
            dimension_semantics=("parallel", "parallel"),
            vmem_limit_bytes=vmem_limit),
        cost_estimate=pl.CostEstimate(
            flops=int(flops), transcendentals=int(transcendentals),
            bytes_accessed=int(bytes_accessed)),
    )(q, k, v_t, q_pe, k_pe)

    if return_attn:
        ctx_t, attn = outs
        return ctx_t, attn
    return outs, None


def _kv_tiled_call(q, k, v, q_pe, k_pe, inv_scale, tile_budget, limit_cap,
                   q_block, kv_block):
    B, Lq, D = q.shape
    Lk = k.shape[1]
    in_dtype = q.dtype
    itemsize = jnp.dtype(in_dtype).itemsize

    tq, tk, block_bytes = _pick_kv_tiles(Lq, Lk, D, itemsize, tile_budget,
                                         q_block, kv_block)
    grid = (B, Lq // tq, Lk // tk)
    kernel = _make_kv_tiled_kernel(inv_scale)

    in_specs = [
        pl.BlockSpec((1, tq, D), lambda b, i, j: (b, i, 0)),   # q  (held over j)
        pl.BlockSpec((1, tk, D), lambda b, i, j: (b, j, 0)),   # k
        pl.BlockSpec((1, tk, D), lambda b, i, j: (b, j, 0)),   # v (natural)
        pl.BlockSpec((tq, D), lambda b, i, j: (i, 0)),         # q_pe
        pl.BlockSpec((tk, D), lambda b, i, j: (j, 0)),         # k_pe
    ]
    # Natural (B, Lq, D) context; the caller transposes once in XLA to the
    # module's (B, D, Lq) view layout (O(B*L*D), vs the O(B*L^2) terms this
    # variant exists to eliminate).
    out_shape = jax.ShapeDtypeStruct((B, Lq, D), in_dtype)
    out_specs = pl.BlockSpec((1, tq, D), lambda b, i, j: (b, i, 0))

    vmem_limit = int(min(limit_cap, max(32 << 20, block_bytes * 3 // 2)))

    flops = 6 * B * Lq * Lk * D
    transcendentals = B * Lq * Lk
    nq = Lq // tq
    bytes_accessed = ((q.size + v.size) * itemsize
                      + B * nq * Lk * D * (2 * itemsize + 4)   # k/v/k_pe re-reads
                      + B * Lq * D * (4 + itemsize))           # q_pe + context

    ctx = pl.pallas_call(
        kernel,
        out_shape=out_shape,
        grid_spec=pltpu.PrefetchScalarGridSpec(
            num_scalar_prefetch=0,
            grid=grid,
            in_specs=in_specs,
            out_specs=out_specs,
            scratch_shapes=[pltpu.VMEM((tq, 1), jnp.float32),   # running max
                            pltpu.VMEM((tq, 1), jnp.float32),   # running sum
                            pltpu.VMEM((tq, D), jnp.float32)]), # accumulator
        compiler_params=pltpu.CompilerParams(
            dimension_semantics=("parallel", "parallel", "arbitrary"),
            vmem_limit_bytes=vmem_limit),
        cost_estimate=pl.CostEstimate(
            flops=int(flops), transcendentals=int(transcendentals),
            bytes_accessed=int(bytes_accessed)),
    )(q, k, v, q_pe, k_pe)

    return jnp.transpose(ctx, (0, 2, 1))    # -> (B, D, Lq) module layout


def tupe_attention_pallas(q, k, v, q_pe, k_pe, scale, *, return_attn=True,
                          attn_dtype=jnp.float32, compute_dtype=None,
                          kv_block=None, q_block=None):
    """Fused TUPE attention.

    q, k, v: (B, L, D).  q_pe (Lq, D), k_pe (Lk, D): already U_q / U_k
    projected (f32).  Returns (ctx_t, attn): ctx_t is (B, D, Lq) ==
    context.transpose(1, 2) of the reference; attn is (B, Lq, Lk) in
    `attn_dtype` (None when return_attn=False).
    """
    B, Lq, D = q.shape
    Lk = k.shape[1]

    if compute_dtype is not None:            # bf16 recommended on v6e / v7x
        q, k, v = (x.astype(compute_dtype) for x in (q, k, v))
    q_pe = q_pe.astype(jnp.float32)          # bias / softmax path stays f32
    k_pe = k_pe.astype(jnp.float32)
    itemsize = jnp.dtype(q.dtype).itemsize
    attn_itemsize = jnp.dtype(attn_dtype).itemsize
    inv_scale = 1.0 / float(scale)

    # Generation-aware VMEM budgets (v7x: 64 MiB/TC -> ~32 MiB tiles, <=48 MiB
    # limit; v5e/v6e: 128 MiB -> ~40 MiB tiles, up to 96 MiB limit).
    vmem_cap = _vmem_capacity_bytes()
    tile_budget = min(40 << 20, vmem_cap // 2)
    limit_cap = min(96 << 20, (vmem_cap * 3) // 4)

    use_kv_tiled = False
    if not return_attn:
        if kv_block is not None:
            use_kv_tiled = True
        else:
            tq_min = _resident_tq_cands(Lq)[-1]
            if _resident_block_bytes(tq_min, Lk, D, itemsize, attn_itemsize,
                                     False) > tile_budget:
                use_kv_tiled = True

    if use_kv_tiled:
        ctx_t = _kv_tiled_call(q, k, v, q_pe, k_pe, inv_scale,
                               tile_budget, limit_cap, q_block, kv_block)
        return ctx_t, None
    return _resident_call(q, k, v, q_pe, k_pe, inv_scale, attn_dtype,
                          return_attn, tile_budget, limit_cap)


# -----------------------------------------------------------------------------
# Module wrapper (parameter setup + glue in plain JAX).
# -----------------------------------------------------------------------------
class MultiHeadAttentionTUPEPallas:
    def __init__(self, d_k, d_v, d_model, n_heads, dropout=0.0,
                 top_down=False, tupe=True, pe_mode='learned', key=None):
        self.d_k = d_k
        self.d_v = d_v
        self.d_model = d_model
        self.n_heads = n_heads
        self.max_len = 10000
        self.tupe = tupe
        self.scale_factor = math.sqrt(d_k)
        if key is None:
            key = jax.random.PRNGKey(0)
        if self.tupe:
            k1, k2, k3 = jax.random.split(key, 3)
            bound = 1.0 / math.sqrt(d_model)
            # nn.Linear(d_model, d_model, bias=False): weight shape (out, in).
            self.U_q_w = jax.random.uniform(k1, (d_model, d_model),
                                            jnp.float32, -bound, bound)
            self.U_k_w = jax.random.uniform(k2, (d_model, d_model),
                                            jnp.float32, -bound, bound)
            # Reference applies pe.data.uniform_(-0.1, 0.1) regardless of
            # pe_mode, so pe ends up uniform in both branches.
            self.pe = jax.random.uniform(k3, (self.max_len, d_model),
                                         jnp.float32, -0.1, 0.1)
            self.scale_factor = math.sqrt(2 * d_k)

    def __call__(self, q, k, v, attn_mask=None, *, return_attn=True,
                 attn_dtype=jnp.float32, compute_dtype=None,
                 kv_block=None, q_block=None):
        if attn_mask is not None:
            # TODO(synk): only the reference's attn_mask=None path (its falsy
            # `if attn_mask:` branch) is reproduced.
            raise NotImplementedError("attn_mask is not supported")
        B, Lq, _ = q.shape
        Lk = k.shape[1]

        if self.tupe:
            # Batch-invariant pe projections: tiny XLA matmuls, done once here.
            q_pe = self.pe[:Lq] @ self.U_q_w.T            # Linear: x @ W^T
            k_pe = self.pe[:Lk] @ self.U_k_w.T
        else:
            q_pe = jnp.zeros((Lq, q.shape[-1]), jnp.float32)
            k_pe = jnp.zeros((Lk, q.shape[-1]), jnp.float32)

        ctx_t, attn = tupe_attention_pallas(
            q, k, v, q_pe, k_pe, self.scale_factor,
            return_attn=return_attn, attn_dtype=attn_dtype,
            compute_dtype=compute_dtype, kv_block=kv_block, q_block=q_block)

        # ctx_t is (B, D, Lq) == context.transpose(1, 2); torch's
        # .contiguous().view(b, -1, n_heads * d_v) is a free row-major reshape.
        context = ctx_t.reshape(B, -1, self.n_heads * self.d_v)
        return context, attn


# -----------------------------------------------------------------------------
# Pure-JAX reference (reproduces the PyTorch forward, attn_mask=None, eval).
# -----------------------------------------------------------------------------
def _reference_jax(mod, q, k, v):
    B, Lq, D = q.shape
    Lk = k.shape[1]
    hp = jax.lax.Precision.HIGHEST
    scores = jnp.einsum('bqd,bkd->bqk', q.astype(jnp.float32),
                        k.astype(jnp.float32), precision=hp)
    if mod.tupe:
        q_pe = mod.pe[:Lq] @ mod.U_q_w.T
        k_pe = mod.pe[:Lk] @ mod.U_k_w.T
        scores = scores + (q_pe @ k_pe.T)[None]
    scores = scores / mod.scale_factor
    attn = jax.nn.softmax(scores, axis=-1)
    context = jnp.einsum('bqk,bkd->bqd', attn, v.astype(jnp.float32),
                         precision=hp)
    context = jnp.transpose(context, (0, 2, 1)).reshape(
        B, -1, mod.n_heads * mod.d_v)
    return context, attn


# -----------------------------------------------------------------------------
# Demo / self-check.
# -----------------------------------------------------------------------------
if __name__ == "__main__":
    B, L = 2, 8
    n_heads, d_k, d_v = 4, 8, 8
    d_model = n_heads * d_k  # 32

    key = jax.random.PRNGKey(0)
    kq, kk, kv_, kparams = jax.random.split(key, 4)
    q = jax.random.normal(kq, (B, L, d_model), jnp.float32)
    k = jax.random.normal(kk, (B, L, d_model), jnp.float32)
    v = jax.random.normal(kv_, (B, L, d_model), jnp.float32)

    mod = MultiHeadAttentionTUPEPallas(d_k, d_v, d_model, n_heads,
                                       dropout=0.0, tupe=True,
                                       pe_mode='learned', key=kparams)

    # 1) Resident-KV variant, f32, returning attn (matches the torch forward).
    context, attn = mod(q, k, v)
    jax.block_until_ready((context, attn))
    ref_ctx, ref_attn = _reference_jax(mod, q, k, v)
    assert context.shape == (B, L, n_heads * d_v)
    assert attn.shape == (B, L, L)
    assert jnp.allclose(attn, ref_attn, atol=1e-4, rtol=1e-4)
    assert jnp.allclose(context, ref_ctx, atol=5e-4, rtol=5e-4)

    # 2) KV-tiled online-softmax variant (return_attn=False), longer sequence.
    L2 = 256
    kq2, kk2, kv2 = jax.random.split(jax.random.PRNGKey(1), 3)
    q2 = jax.random.normal(kq2, (B, L2, d_model), jnp.float32)
    k2 = jax.random.normal(kk2, (B, L2, d_model), jnp.float32)
    v2 = jax.random.normal(kv2, (B, L2, d_model), jnp.float32)
    ref_ctx2, _ = _reference_jax(mod, q2, k2, v2)

    ctx2, attn2 = mod(q2, k2, v2, return_attn=False, kv_block=128, q_block=128)
    jax.block_until_ready(ctx2)
    assert attn2 is None
    assert ctx2.shape == ref_ctx2.shape
    assert jnp.allclose(ctx2, ref_ctx2, atol=1e-3, rtol=1e-3)

    # 3) bf16 compute path (resident variant), dtype-aware loose tolerance.
    ctx3, _ = mod(q2, k2, v2, return_attn=False,
                  compute_dtype=jnp.bfloat16)
    jax.block_until_ready(ctx3)
    assert jnp.allclose(ctx3.astype(jnp.float32), ref_ctx2,
                        atol=2e-2, rtol=2e-2)

    print("KERNEL_OK")
</pallas_src>

<mosaic_0001>
module attributes {stable_mosaic.version = 11 : i64} {
  func.func @kernel(%arg0: i32, %arg1: i32, %arg2: memref<1x8x32xf32, #tpu.memory_space<vmem>>, %arg3: memref<1x8x32xf32, #tpu.memory_space<vmem>>, %arg4: memref<1x32x8xf32, #tpu.memory_space<vmem>>, %arg5: memref<8x32xf32, #tpu.memory_space<vmem>>, %arg6: memref<8x32xf32, #tpu.memory_space<vmem>>, %arg7: memref<1x32x8xf32, #tpu.memory_space<vmem>>, %arg8: memref<1x8x8xf32, #tpu.memory_space<vmem>>) attributes {dimension_semantics = [#tpu.dimension_semantics<parallel>, #tpu.dimension_semantics<parallel>], iteration_bounds = array<i64: 2, 1>, scalar_prefetch = 0 : i64, scratch_operands = 0 : i64, tpu.core_type = #tpu.core_type<tc>, window_params = [{transform_indices = @transform_0, window_bounds = array<i64: 1, 8, 32>}, {pipeline_mode = #tpu.pipeline_mode<synchronous>, transform_indices = @transform_1, window_bounds = array<i64: 1, 8, 32>}, {pipeline_mode = #tpu.pipeline_mode<synchronous>, transform_indices = @transform_2, window_bounds = array<i64: 1, 32, 8>}, {transform_indices = @transform_3, window_bounds = array<i64: 8, 32>}, {pipeline_mode = #tpu.pipeline_mode<synchronous>, transform_indices = @transform_4, window_bounds = array<i64: 8, 32>}, {transform_indices = @transform_5, window_bounds = array<i64: 1, 32, 8>}, {transform_indices = @transform_6, window_bounds = array<i64: 1, 8, 8>}]} {
    %c0 = arith.constant 0 : index
    %c0_0 = arith.constant 0 : index
    %c0_1 = arith.constant 0 : index
    %0 = vector.load %arg2[%c0, %c0_0, %c0_1] : memref<1x8x32xf32, #tpu.memory_space<vmem>>, vector<1x8x32xf32>
    %1 = vector.shape_cast %0 : vector<1x8x32xf32> to vector<8x32xf32>
    %cst = arith.constant 2.500000e-01 : f32
    %2 = vector.broadcast %cst : f32 to vector<8x32xf32>
    %3 = arith.mulf %1, %2 : vector<8x32xf32>
    %c0_2 = arith.constant 0 : index
    %c0_3 = arith.constant 0 : index
    %c0_4 = arith.constant 0 : index
    %4 = vector.load %arg3[%c0_2, %c0_3, %c0_4] : memref<1x8x32xf32, #tpu.memory_space<vmem>>, vector<1x8x32xf32>
    %5 = vector.shape_cast %4 : vector<1x8x32xf32> to vector<8x32xf32>
    %c0_5 = arith.constant 0 : index
    %c0_6 = arith.constant 0 : index
    %c0_7 = arith.constant 0 : index
    %6 = vector.load %arg4[%c0_5, %c0_6, %c0_7] : memref<1x32x8xf32, #tpu.memory_space<vmem>>, vector<1x32x8xf32>
    %7 = vector.shape_cast %6 : vector<1x32x8xf32> to vector<32x8xf32>
    %cst_8 = arith.constant dense<0.000000e+00> : vector<8x8xf32>
    %8 = tpu.matmul %3, %5, %cst_8 {dimension_numbers = #tpu.dot_dimension_numbers<[1], [1], [0], [0], [0, 0, 1, 0], [], []>} : vector<8x32xf32>, vector<8x32xf32>, vector<8x8xf32> -> vector<8x8xf32>
    %c0_9 = arith.constant 0 : index
    %c0_10 = arith.constant 0 : index
    %9 = vector.load %arg5[%c0_9, %c0_10] : memref<8x32xf32, #tpu.memory_space<vmem>>, vector<8x32xf32>
    %cst_11 = arith.constant 2.500000e-01 : f32
    %10 = vector.broadcast %cst_11 : f32 to vector<8x32xf32>
    %11 = arith.mulf %9, %10 : vector<8x32xf32>
    %c0_12 = arith.constant 0 : index
    %c0_13 = arith.constant 0 : index
    %12 = vector.load %arg6[%c0_12, %c0_13] : memref<8x32xf32, #tpu.memory_space<vmem>>, vector<8x32xf32>
    %cst_14 = arith.constant dense<0.000000e+00> : vector<8x8xf32>
    %13 = tpu.matmul %11, %12, %cst_14 {dimension_numbers = #tpu.dot_dimension_numbers<[1], [1], [0], [0], [0, 0, 1, 0], [], []>} : vector<8x32xf32>, vector<8x32xf32>, vector<8x8xf32> -> vector<8x8xf32>
    %14 = arith.addf %8, %13 : vector<8x8xf32>
    %cst_15 = arith.constant dense<0xFF800000> : vector<8xf32>
    %15 = vector.multi_reduction <maximumf>, %14, %cst_15 [1] : vector<8x8xf32> to vector<8xf32>
    %16 = vector.shape_cast %15 : vector<8xf32> to vector<8x1xf32>
    %17 = vector.broadcast %16 : vector<8x1xf32> to vector<8x8xf32>
    %18 = arith.subf %14, %17 : vector<8x8xf32>
    %19 = math.exp %18 : vector<8x8xf32>
    %cst_16 = arith.constant dense<0.000000e+00> : vector<8xf32>
    %20 = vector.multi_reduction <add>, %19, %cst_16 [1] : vector<8x8xf32> to vector<8xf32>
    %21 = vector.shape_cast %20 : vector<8xf32> to vector<8x1xf32>
    %22 = tpu.reciprocal %21 {approx = true} : vector<8x1xf32> -> vector<8x1xf32>
    %23 = arith.mulf %21, %22 : vector<8x1xf32>
    %cst_17 = arith.constant 2.000000e+00 : f32
    %24 = vector.broadcast %cst_17 : f32 to vector<8x1xf32>
    %25 = arith.subf %24, %23 : vector<8x1xf32>
    %26 = arith.mulf %22, %25 : vector<8x1xf32>
    %27 = arith.mulf %21, %26 : vector<8x1xf32>
    %cst_18 = arith.constant 2.000000e+00 : f32
    %28 = vector.broadcast %cst_18 : f32 to vector<8x1xf32>
    %29 = arith.subf %28, %27 : vector<8x1xf32>
    %30 = arith.mulf %26, %29 : vector<8x1xf32>
    %31 = vector.broadcast %30 : vector<8x1xf32> to vector<8x8xf32>
    %32 = arith.mulf %19, %31 : vector<8x8xf32>
    %cst_19 = arith.constant dense<0.000000e+00> : vector<32x8xf32>
    %33 = tpu.matmul %7, %32, %cst_19 {dimension_numbers = #tpu.dot_dimension_numbers<[1], [1], [0], [0], [0, 0, 1, 0], [], []>} : vector<32x8xf32>, vector<8x8xf32>, vector<32x8xf32> -> vector<32x8xf32>
    %c0_20 = arith.constant 0 : index
    %c0_21 = arith.constant 0 : index
    %c0_22 = arith.constant 0 : index
    %34 = vector.load %arg7[%c0_20, %c0_21, %c0_22] : memref<1x32x8xf32, #tpu.memory_space<vmem>>, vector<1x32x8xf32>
    %35 = vector.shape_cast %34 : vector<1x32x8xf32> to vector<32x8xf32>
    %36 = vector.shape_cast %33 : vector<32x8xf32> to vector<1x32x8xf32>
    tpu.vector_store %arg7[%c0_20, %c0_21, %c0_22], %36 {strides = array<i32>} : memref<1x32x8xf32, #tpu.memory_space<vmem>>, vector<1x32x8xf32>,
    %c0_23 = arith.constant 0 : index
    %c0_24 = arith.constant 0 : index
    %c0_25 = arith.constant 0 : index
    %37 = vector.load %arg8[%c0_23, %c0_24, %c0_25] : memref<1x8x8xf32, #tpu.memory_space<vmem>>, vector<1x8x8xf32>
    %38 = vector.shape_cast %37 : vector<1x8x8xf32> to vector<8x8xf32>
    %39 = vector.shape_cast %32 : vector<8x8xf32> to vector<1x8x8xf32>
    tpu.vector_store %arg8[%c0_23, %c0_24, %c0_25], %39 {strides = array<i32>} : memref<1x8x8xf32, #tpu.memory_space<vmem>>, vector<1x8x8xf32>,
    return
  }
  func.func @transform_0(%arg0: i32, %arg1: i32) -> (i32, i32, i32) {
    %c0_i32 = arith.constant 0 : i32
    %c0_i32_0 = arith.constant 0 : i32
    return %arg0, %arg1, %c0_i32 : i32, i32, i32
  }
  func.func @transform_1(%arg0: i32, %arg1: i32) -> (i32, i32, i32) {
    %c0_i32 = arith.constant 0 : i32
    %c0_i32_0 = arith.constant 0 : i32
    %c0_i32_1 = arith.constant 0 : i32
    return %arg0, %c0_i32, %c0_i32_0 : i32, i32, i32
  }
  func.func @transform_2(%arg0: i32, %arg1: i32) -> (i32, i32, i32) {
    %c0_i32 = arith.constant 0 : i32
    %c0_i32_0 = arith.constant 0 : i32
    %c0_i32_1 = arith.constant 0 : i32
    return %arg0, %c0_i32, %c0_i32_0 : i32, i32, i32
  }
  func.func @transform_3(%arg0: i32, %arg1: i32) -> (i32, i32) {
    %c0_i32 = arith.constant 0 : i32
    %c0_i32_0 = arith.constant 0 : i32
    return %arg1, %c0_i32 : i32, i32
  }
  func.func @transform_4(%arg0: i32, %arg1: i32) -> (i32, i32) {
    %c0_i32 = arith.constant 0 : i32
    %c0_i32_0 = arith.constant 0 : i32
    %c0_i32_1 = arith.constant 0 : i32
    return %c0_i32, %c0_i32_0 : i32, i32
  }
  func.func @transform_5(%arg0: i32, %arg1: i32) -> (i32, i32, i32) {
    %c0_i32 = arith.constant 0 : i32
    %c0_i32_0 = arith.constant 0 : i32
    return %arg0, %c0_i32, %arg1 : i32, i32, i32
  }
  func.func @transform_6(%arg0: i32, %arg1: i32) -> (i32, i32, i32) {
    %c0_i32 = arith.constant 0 : i32
    %c0_i32_0 = arith.constant 0 : i32
    return %arg0, %arg1, %c0_i32 : i32, i32, i32
  }
}

</mosaic_0001>

<bundles_post_ra>
// kernel: tpu_custom_call.1
= control target key start
LH: loop header
LB: loop body
LE: loop exit
PB: predicated region body
PF: predicated region fallthrough
CT: control target
= control target key end

     0   :  { %s993_s0 = inlined_call_operand.vmem [shape: f32[2,8,32], index: 0, kind: input, shape index: {}]   ;;  %s994_s1 = inlined_call_operand.vmem [shape: f32[2,8,32], index: 1, kind: input, shape index: {}]   ;;  %s995_s2 = inlined_call_operand.vmem [shape: f32[2,32,8], index: 2, kind: input, shape index: {}]   ;;  %s996_s3 = inlined_call_operand.vmem [shape: f32[8,32], index: 3, kind: input, shape index: {}]   ;;  %s997_s4 = inlined_call_operand.vmem [shape: f32[8,32], index: 4, kind: input, shape index: {}]   ;;  %s998_s5 = inlined_call_operand.vmem [shape: f32[2,32,8], index: 5, kind: output, shape index: {0}]   ;;  %s999_s6 = inlined_call_operand.hbm [shape: f32[2,8,8], index: 6, kind: output, shape index: {1}]  }
   0x1   :  { %1001 = sst [smem:[#allocation5_spill]] %s993_s0 }
   0x2   :  { %1002 = sst [smem:[#allocation6_spill]] %s994_s1 }
   0x3   :  { %12 = vsyncpa [#allocation3], 0 }
   0x4   :  { %14 = vsyncpa [#allocation3 + $0x1], 0  ;;  %s860_s21 = smov 0   ;;  %s862_s22 = smov 0  }
   0x5   :  { %s864_s23 = smov 0   ;;  %s866_s24 = smov 0  }
   0x6   :  { %s868_s25 = smov 0   ;;  %s870_s26 = smov 0  }
   0x7 LB: > { %s657_s27 = sadd.s32 4294967295, %s823_s26   ;;  %s658_s28 = sadd.s32 4294967294, %s823_s26   ;;  %s823_s26 = sphi %s870_s26, %s20_s26   ;;  %s819_s25 = sphi %s868_s25, %s1012_s25   ;;  %s815_s24 = sphi %s866_s24, %s1011_s24   ;;  %s811_s23 = sphi %s864_s23, %s1010_s23   ;;  %s807_s22 = sphi %s862_s22, %s1009_s22   ;;  %s803_s21 = sphi %s860_s21, %s1008_s21  }
   0x8   : > { %s32_s29 = sadd.s32 1, %s819_s25  ;;  %s196_s30 = sadd.s32 1, %s811_s23 }
   0x9   : > { %p34_p0 = scmp.ge.s32.totalorder %s32_s29, 2  ;;  %p206_p1 = scmp.ne.s32.totalorder %s811_s23, %s807_s22 }
   0xa   : > { %p207_p2 = scmp.eq.s32.totalorder %s657_s27, 1  ;;  %p212_p3 = scmp.ne.s32.totalorder %s807_s22, %s803_s21 }
   0xb   : > { %s1014_s29 = smov (%p34_p0, %s32_s29), 0  ;;  %p213_p5 = scmp.eq.s32.totalorder %s658_s28, 1 }
   0xc   : > { %p900_p4 = por %p207_p2, %p206_p1  ;;  %s191_s8 = ssub.s32 %s819_s25, %s1014_s29 }
   0xd   : > { %p662_p6 = scmp.ge.s32.totalorder %s823_s26, 1  ;;  %p194_p7 = scmp.eq.s32.totalorder %s191_s8, 0 }
   0xe   : > { %p907_p8 = por %p213_p5, %p212_p3  ;;  %p266_p9 = scmp.lt.s32.totalorder %s823_s26, 3 }
   0xf   : > { %s913_s10 = scalar_select %p194_p7, %s811_s23, %s196_s30  }
  0x10   : > { %p267_p10 = pnand %p662_p6, %p266_p9 }
  0x11   : > { %p319_p11 = scmp.lt.s32.totalorder (!%p267_p10), %s815_s24, 1  ;;  %s1005_s0 = sld [smem:[#allocation5_spill]] (!%p267_p10) }
  0x12   : > { %270 = sbr.rel (%p267_p10) target bundleno = 571 (0x23b), region = 40  ;;  %s1006_s1 = sld [smem:[#allocation6_spill]] (!%p267_p10) }
  0x13   : > { %s316_s30 = sand.u32 (!%p267_p10), 1, %s807_s22   ;;  %s680_s17 = sshll.u32 (!%p267_p10), %s815_s24, 3 }
  0x14   : > { %s663_s11 = sshll.u32 (!%p267_p10), %s316_s30, 3  ;;  %s500_s20 = scalar_lea.hbm (!%p267_p10), %s999_s6, %s680_s17 }
  0x17   : > { %v356_v0 = vld [vmem:[%s997_s4] sm:$0xff]  ;;  %vm357_vm0 = vcmask 261120   ;;  %s923_s15 = scalar_select %p319_p11, %s815_s24, 1  ;;  %vm410_vm1 = vcmask 64512  }
  0x18   : > { %v354_v1 = vld [vmem:[%s996_s3] sm:$0xff]  ;;  %670 = vmatpush.xpose.msk.msra.mxu0 %vm357_vm0, %v356_v0  ;;  %s765_s24 = scalar_lea.hbm %s999_s6, 16 }
  0x19   : > { %v355_v2 = vmul.f32 0.25, %v354_v1  ;;  %s664_s16 = sshll.u32 %s923_s15, 3  ;;  %s1000_s8 = sshll.u32 %s923_s15, 5 }
  0x1a   : > { %s325_s19 = scalar_lea.vmem %s1005_s0, %s664_s16  ;;  %s329_s28 = scalar_lea.vmem %s1006_s1, %s664_s16 }
  0x1b   : > { %671 = vmatmul.msk.f32.vlgmr.msra.gmra.mxu0 %vm357_vm0, %v355_v2  ;;  %v347_v3 = vld [vmem:[%s325_s19] sm:$0xff]  ;;  %s334_s14 = scalar_lea.vmem %s995_s2, %s1000_s8  ;;  %s318_s16 = scalar_lea.vmem [#allocation2], %s663_s11 }
  0x1c   : > { %v349_v4 = vld [vmem:[%s329_s28] sm:$0xff]  ;;  %v348_v5 = vmul.f32 0.25, %v347_v3  ;;  %v352_v25 = vld [vmem:[%s334_s14 + $0x10] sm:$0xff]  ;;  %v351_v26 = vld [vmem:[%s334_s14 + $0x8] sm:$0xff]  ;;  %s502_s27 = sshll.u32 %s318_s16, 4  ;;  %s504_s28 = sshll.u32 %s500_s20, 4  ;;  %s503_s27 = int_to_ptr.vmem [resolvable:$true] %s502_s27  ;;  %s505_s28 = int_to_ptr.hbm [resolvable:$true] %s504_s28 }
  0x1d   : > { %672 = vmatpush.xpose.msk.msra.mxu1 %vm357_vm0, %v349_v4  ;;  %v350_v24 = vld [vmem:[%s334_s14] sm:$0xff]  ;;  %v353_v27 = vld [vmem:[%s334_s14 + $0x18] sm:$0xff]  ;;  %s486_s11 = scalar_lea.sflag [#allocation3], %s316_s30  ;;  %s759_s12 = sshra.s32 %s505_s28, 4  ;;  %s760_s12 = int_to_ptr.hbm [resolvable:$true] %s759_s12 }
  0x1e   : > { %s761_s13 = scalar_lea.hbm %s760_s12, 8  ;;  %p766_p1 = scmp.lt.s32.totalorder %s760_s12, %s999_s6 }
  0x1f   : > { %p762_p12 = scmp.ne.s32.totalorder %s760_s12, %s761_s13  ;;  %p767_p2 = scmp.lt.s32.totalorder %s765_s24, %s761_s13 }
  0x20   : > { %673 = vmatmul.msk.f32.vlgmr.msra.gmra.mxu1 %vm357_vm0, %v348_v5 }
  0x21   : > { %p763_p13 = pnand %p762_p12, %p900_p4  ;;  %p768_p3 = por %p767_p2, %p766_p1 }
  0x23   : > { %p764_p0 = pneg %p763_p13 }
  0x25   : > { %p769_p5 = pnand %p768_p3, %p764_p0 }
  0x98   : > { %v381_v6 = vpop.f32.mrf.mxu0 }
  0x9d   : > { %v407_v7 = vpop.f32.mrf.mxu1 }
  0x9e   : > { %v408_v8 = vadd.f32 %v407_v7, %v381_v6 }
  0xa0   : > { %v411_v9 = vsel %vm410_vm1, %v408_v8, -inf }
  0xa1   : > { %412 = vmax.xlane.f32.xlu0 %v411_v9 }
 0x114   : > { %v413_v10 = vpop.xlane.xlu0 %412 }
 0x115   : > { %v414_v11 = vsub.f32 %v408_v8, %v413_v10 }
 0x117   : > { %v415_v12 = vmul.f32 1.442695, %v414_v11 }
 0x119   : > { %741 = vpow2.f32 %v415_v12 }
 0x11f   : > { %v742_v13 = vpop.eup %741 }
 0x120   : > { %v417_v14 = vsel %vm410_vm1, %v742_v13, 0.0 }
 0x121   : > { %418 = vadd.xlane.f32.xlu0 %v417_v14 }
 0x194   : > { %v419_v15 = vpop.xlane.xlu0 %418 }
 0x195   : > { %743 = vrcp.f32 %v419_v15 }
 0x19b   : > { %v744_v16 = vpop.eup %743 }
 0x19c   : > { %v421_v17 = vmul.f32 %v744_v16, %v419_v15 }
 0x19e   : > { %v422_v18 = vsub.f32 2.0, %v421_v17 }
 0x1a0   : > { %v423_v19 = vmul.f32 %v744_v16, %v422_v18 }
 0x1a2   : > { %v424_v20 = vmul.f32 %v423_v19, %v419_v15 }
 0x1a4   : > { %v425_v21 = vsub.f32 2.0, %v424_v20 }
 0x1a6   : > { %v426_v22 = vmul.f32 %v425_v21, %v423_v19 }
 0x1a8   : > { %v427_v23 = vmul.f32 %v742_v13, %v426_v22 }
 0x1aa   : > { %674 = vmatpush.xpose.msk.msra.mxu2 %vm410_vm1, %v427_v23  ;;  %685 = vmatpush.xpose.msk.msra.mxu3 %vm410_vm1, %v427_v23  ;;  %476 = vst.msk [vmem:[%s318_s16] sm:$0xff] %vm410_vm1, %v427_v23 }
 0x1ad   : > { %675 = vmatmul.msk.f32.vlgmr.msra.gmra.mxu2 %vm410_vm1, %v350_v24  ;;  %677 = vmatmul.msk.f32.vlgmr.msra.gmra.mxu3 %vm410_vm1, %v352_v25 }
 0x1b5   : > { %676 = vmatmul.msk.f32.gmra.mxu2 %vm410_vm1, %v351_v26  ;;  %678 = vmatmul.msk.f32.gmra.mxu3 %vm410_vm1, %v353_v27 }
 0x1b6   : > { %772 = shalt.err (!%p769_p5)
}
 0x1b7   : > { %686 = dma.vmem_to_hbm [thread:$0]  (%p900_p4), %s503_s27, 128, %s505_s28, %s486_s11  }
 0x1b8   : > { %s1007_s30 = sshll.u32 %s923_s15, 5 }
 0x1b9   : > { %s346_s18 = scalar_lea.vmem %s998_s5, %s1007_s30 }
 0x230   : > { %v460_v28 = vpop.f32.mrf.mxu2  ;;  %v466_v29 = vpop.f32.mrf.mxu3 }
 0x231   : > { %472 = vst.msk [vmem:[%s346_s18] sm:$0xff] %vm410_vm1, %v460_v28 }
 0x232   : > { %474 = vst.msk [vmem:[%s346_s18 + $0x10] sm:$0xff] %vm410_vm1, %v466_v29 }
 0x238   : > { %v463_v30 = vpop.f32.mrf.mxu2  ;;  %v469_v31 = vpop.f32.mrf.mxu3 }
 0x239   : > { %473 = vst.msk [vmem:[%s346_s18 + $0x8] sm:$0xff] %vm410_vm1, %v463_v30 }
 0x23a   : > { %475 = vst.msk [vmem:[%s346_s18 + $0x18] sm:$0xff] %vm410_vm1, %v469_v31 }
 0x23b PF: > { %p692_p4 = scmp.ge.s32.totalorder %s823_s26, 2  ;;  %s527_s0 = sand.u32 1, %s803_s21  }
 0x23c   : > { %s528_s1 = scalar_lea.sflag [#allocation3], %s527_s0 }
 0x23d   : > { %p689_p6 = pnand %p692_p4, %p907_p8 }
 0x23f   : > { %p690_p7 = pneg %p689_p6 }
 0x241   : > { %798 = dma.done.wait (%p690_p7), %s528_s1, 128  }
 0x242   : > { %800 = vsyncadd (%p690_p7), %s528_s1, 4294967168  ;;  %s20_s26 = sadd.s32 1, %s823_s26   ;;  %s1008_s21 = smov %s807_s22 }
 0x243   : > { %p17_p9 = scmp.ge.s32.totalorder %s20_s26, 4   ;;  %s1009_s22 = smov %s811_s23 }
 0x244   : > { %s1010_s23 = smov %s913_s10  ;;  %s1011_s24 = smov %s819_s25 }
 0x245   : > { %s1012_s25 = smov %s1014_s29  ;;  %19 = sbr.rel (!%p17_p9) target bundleno = 7 (0x7), region = 96 }
 0x24a   :  { %534 = vsyncpa [#allocation3], 1 }
 0x24b   :  { %536 = vsyncpa [#allocation3 + $0x1], 1 }

</bundles_post_ra>
